<compile_context>
chip_gen: v7x
topology: tpu7x:2x2x1
jax: 0.10.0
libtpu: 0.0.40
codegen_flags: <defaults>
</compile_context>

<pallas_src>
import functools
import math
import numpy as np
import jax
import jax.numpy as jnp
from jax.experimental import pallas as pl
from jax.experimental.pallas import tpu as pltpu

# ----------------------------------------------------------------------------
# Synthetic MaskDecoder configuration (the attributes the forward pass reads).
# ----------------------------------------------------------------------------
EMB_DIM = 32
MASK_SHAPE = (1, 8, 8)          # mask_dec.mask_shape
MASK_DWS_FACT = (1, 1, 1)       # mask_dec.mask_dws_fact
SAMPLE_STRIDES = (1, 4, 4)      # mask_dec.sample_strides
PRED_DWS_FACT = (1, 1, 1)       # mask_dec.pred_dws_fact
IGNORE_LABEL = 0
DICE_EPS = 1e-6
M_FLAT = int(np.prod(MASK_SHAPE))
PACK = 2                        # patches packed per 128-lane row (2 * 64 = 128)

# TODO(synk): the actual MaskDecoder architecture lives in `self.model` (not
# provided here); it is modelled as Linear(emb_dim -> prod(mask_shape)) + sigmoid.


def _round_up(x, m):
    return ((x + m - 1) // m) * m


def _tpu_tuning():
    """Per-generation tile / core / VMEM tuning.

    v7x: 2 TensorCores + 64 MiB VMEM per TC -> split rows across cores, explicit
         scoped-VMEM headroom.
    v5e: single TC, 16 MiB scoped-VMEM default (128 MiB physical) -> raise the
         limit, keep a moderate tile.
    v6e / default: single TC, 128 MiB physical VMEM -> large tile.
    """
    kind = ""
    try:
        kind = jax.devices()[0].device_kind.lower()
    except Exception:
        pass
    if "v7" in kind:
        return dict(num_par=2, tile_p_max=8192, vmem_limit_bytes=48 << 20)
    if "v5" in kind:
        return dict(num_par=1, tile_p_max=4096, vmem_limit_bytes=64 << 20)
    return dict(num_par=1, tile_p_max=8192, vmem_limit_bytes=64 << 20)


# ----------------------------------------------------------------------------
# Pallas kernel: decode + mask + Sorensen-Dice partial reduction.
# ----------------------------------------------------------------------------
def _dice_decode_kernel(emb_ref, w_ref, b_ref, code_ref, num_ref, den_ref,
                        *, n_rows, ragged):
    # num_ref / den_ref are per-parallel-core (1, 128) lane accumulators; they
    # stay VMEM-resident across the reduction ("arbitrary") grid axis.
    @pl.when(pl.program_id(1) == 0)
    def _():
        num_ref[...] = jnp.zeros_like(num_ref)
        den_ref[...] = jnp.zeros_like(den_ref)

    # Packed block-diagonal MaskDecoder: bf16 MXU matmul, f32 accumulation.
    logits = jnp.dot(emb_ref[...], w_ref[...],
                     preferred_element_type=jnp.float32) + b_ref[...]
    decoded = jax.nn.sigmoid(logits)                       # (tile_p, 128) f32

    # Single int8 code slab: 0 = ignored/invalid, 1 = valid bg, 2 = valid fg.
    code = code_ref[...].astype(jnp.int32)
    wmsk = (code > 0).astype(jnp.float32)                  # validity weight (w^2 == w)
    mtgt_b = code == 2                                     # target * weight, {0,1}

    if ragged:
        # The final block(s) run past the real row count (no host-side padding).
        # Out-of-bounds rows hold garbage (possibly NaN after the sigmoid), so
        # zero `decoded` with a select and drop their target contribution.
        tile_p = emb_ref.shape[0]
        row_start = (pl.program_id(0) * pl.num_programs(1)
                     + pl.program_id(1)) * tile_p
        row_ids = row_start + jax.lax.broadcasted_iota(jnp.int32, (tile_p, 1), 0)
        row_ok = row_ids < n_rows
        decoded = jnp.where(row_ok, decoded, 0.0)
        mtgt = (row_ok & mtgt_b).astype(jnp.float32)
    else:
        mtgt = mtgt_b.astype(jnp.float32)

    # Per-lane accumulation: VPU multiplies + one sublane reduce per step; the
    # single cross-lane reduce happens outside the kernel.  The denominator
    # folds in sum(t*w) (== sum((t*w)^2) for strictly binary targets/weights).
    num_ref[...] += jnp.sum(decoded * mtgt, axis=0, keepdims=True)
    den_ref[...] += jnp.sum(decoded * decoded * wmsk + mtgt, axis=0, keepdims=True)


def dice_decoder_loss(emb, w, b, code, *, tile_p_max=None, num_par=None,
                      vmem_limit_bytes=None):
    """emb:(R, Ce) bf16 packed embeddings, w:(Ce, Me) bf16 block-diagonal
    decoder weight, b:(1, Me) f32 bias, code:(R, Me) int8 label codes.

    Returns -2*sum(d*t*w) / clamp(sum(d^2*w) + sum(t*w), eps).
    """
    tune = _tpu_tuning()
    tile_p_max = tune["tile_p_max"] if tile_p_max is None else tile_p_max
    num_par = tune["num_par"] if num_par is None else num_par
    vmem_limit_bytes = (tune["vmem_limit_bytes"] if vmem_limit_bytes is None
                        else vmem_limit_bytes)

    R, Ce = emb.shape
    Me = w.shape[1]

    # Tile sizing: big enough to amortize the ~0.35us per-grid-step overhead,
    # small enough that the double-buffered streamed set (~tile_p * 384 B) plus
    # in-kernel f32 temporaries stays well inside the scoped VMEM limit.
    rows_per_core = pl.cdiv(R, num_par)
    tile_p = int(min(tile_p_max, _round_up(rows_per_core, 64)))
    if tile_p >= R:
        # Tiny input: one full-extent block (exact shape), single core.
        tile_p, num_par = R, 1
    steps = int(pl.cdiv(R, num_par * tile_p))
    ragged = num_par * steps * tile_p != R
    last_blk = int(pl.cdiv(R, tile_p)) - 1

    def row_block(p, i):
        idx = p * steps + i
        if ragged:
            # Steps that lie entirely past the data re-read the last block; the
            # kernel's row mask zeroes their contribution.
            idx = jnp.minimum(idx, last_blk)
        return (idx, 0)

    cost = pl.CostEstimate(
        flops=2 * R * Ce * Me + 8 * R * Me,
        transcendentals=R * Me,
        bytes_accessed=2 * R * Ce + R * Me + 2 * Ce * Me + 4 * Me
                       + 8 * num_par * Me)

    kernel = functools.partial(_dice_decode_kernel, n_rows=R, ragged=ragged)
    num_out, den_out = pl.pallas_call(
        kernel,
        out_shape=(jax.ShapeDtypeStruct((num_par, Me), jnp.float32),
                   jax.ShapeDtypeStruct((num_par, Me), jnp.float32)),
        grid_spec=pltpu.PrefetchScalarGridSpec(
            num_scalar_prefetch=0,
            grid=(num_par, steps),
            in_specs=[
                pl.BlockSpec((tile_p, Ce), row_block),
                pl.BlockSpec((Ce, Me), lambda p, i: (0, 0)),
                pl.BlockSpec((1, Me), lambda p, i: (0, 0)),
                pl.BlockSpec((tile_p, Me), row_block),
            ],
            out_specs=[
                pl.BlockSpec((1, Me), lambda p, i: (p, 0)),
                pl.BlockSpec((1, Me), lambda p, i: (p, 0)),
            ],
        ),
        compiler_params=pltpu.CompilerParams(
            dimension_semantics=("parallel", "arbitrary"),
            vmem_limit_bytes=vmem_limit_bytes),
        cost_estimate=cost,
    )(emb, w, b, code)

    num = jnp.sum(num_out)                      # single cross-lane reduce, in JAX
    den = jnp.sum(den_out)
    return -2.0 * num / jnp.maximum(den, DICE_EPS)


# ----------------------------------------------------------------------------
# Plain-JAX glue reproducing the patch-extraction / cropping logic.
# ----------------------------------------------------------------------------
def get_slicing_crops(pred_shape, target_shape, pred_ds_factor, real_patch_shape):
    upscaled = [s * f for s, f in zip(pred_shape, pred_ds_factor)]
    diff = [t - u for t, u in zip(target_shape, upscaled)]
    assert all(d >= 0 for d in diff) and all(d % 2 == 0 for d in diff)
    padding = [d // 2 for d in diff]
    ct, cp = [slice(None), slice(None)], [slice(None), slice(None)]
    for dim, pad in enumerate(padding):
        real_pad = pad - int(real_patch_shape[dim] / 2)
        if real_pad > 0:
            ct.append(slice(real_pad, -real_pad)); cp.append(slice(None))
        elif real_pad < 0:
            cp.append(slice(-math.floor(real_pad / pred_ds_factor[dim]),
                            math.floor(real_pad / pred_ds_factor[dim])))
            ct.append(slice(None))
        else:
            ct.append(slice(None)); cp.append(slice(None))
    return tuple(ct), tuple(cp)


def extract_point_embeddings(pred, strides):
    # pred: (N, C, D, H, W); patches of shape (1,1,1), row-major patch order.
    p = pred[:, :, ::strides[0], ::strides[1], ::strides[2]]
    N, C = p.shape[:2]
    nb = p.shape[2:]
    emb = jnp.transpose(p.reshape(N, C, -1), (0, 2, 1)).reshape(-1, C)
    return emb, nb


def extract_gt_patches(gt, shape, stride, nb):
    # gt: (N, C, D, H, W); patches start at 0, counts limited to nb per dim.
    N, C = gt.shape[:2]
    def idx(n, sh, st):
        return jnp.arange(n)[:, None] * st + jnp.arange(sh)[None, :]
    i_d = idx(nb[0], shape[0], stride[0])
    i_h = idx(nb[1], shape[1], stride[1])
    i_w = idx(nb[2], shape[2], stride[2])
    D = i_d[:, None, None, :, None, None]
    H = i_h[None, :, None, None, :, None]
    W = i_w[None, None, :, None, None, :]
    patches = gt[:, :, D, H, W]                               # (N,C,nD,nH,nW,sD,sH,sW)
    patches = patches.reshape(N, C, nb[0] * nb[1] * nb[2], *shape)
    patches = jnp.transpose(patches, (0, 2, 1, 3, 4, 5)).reshape(-1, C, *shape)
    return patches


def extract_center_values(gt, start, stride, nb):
    c = gt[:, :, start[0]::stride[0], start[1]::stride[1], start[2]::stride[2]]
    c = c[:, :, :nb[0], :nb[1], :nb[2]]
    N, C = c.shape[:2]
    return jnp.transpose(c.reshape(N, C, -1), (0, 2, 1)).reshape(-1, C)


def latent_mask_loss_forward(pred, gt_segm, dec_w, dec_b, **tuning):
    """pred: (N, EMB_DIM, D, H, W) float32;  gt_segm: (N, 2, D, H, W) int32."""
    real_shape_mask = tuple(pt * fc for pt, fc in zip(MASK_SHAPE, MASK_DWS_FACT))
    full_target_shape = gt_segm.shape[-3:]
    assert all(i <= j for i, j in zip(real_shape_mask, full_target_shape))

    ct, cp = get_slicing_crops(pred.shape[2:], full_target_shape,
                               PRED_DWS_FACT, real_shape_mask)
    gt_c = gt_segm[ct]
    pred_c = pred[cp]

    prediction_strides = tuple(s // f for s, f in zip(SAMPLE_STRIDES, PRED_DWS_FACT))
    emb, nb = extract_point_embeddings(pred_c, prediction_strides)        # (P, C)

    gt_patches = extract_gt_patches(gt_c, real_shape_mask,
                                    SAMPLE_STRIDES, nb)[:, 0]             # (P, sD,sH,sW)
    center_start = tuple(int(sh / 2) for sh in real_shape_mask)
    centers = extract_center_values(gt_c, center_start, SAMPLE_STRIDES, nb)  # (P, 2)
    label_at_center = centers[:, 0]
    # boundary_label is None in this config -> patch_is_on_boundary unused.

    ignore_masks = gt_patches == IGNORE_LABEL
    valid_patch = label_at_center != IGNORE_LABEL
    target_me = gt_patches != label_at_center[:, None, None, None]

    dsl = (slice(None),) + tuple(slice(int(f / 2), None, f) for f in MASK_DWS_FACT)
    target_me = target_me[dsl]
    ignore_masks = ignore_masks[dsl]
    # mask_dws_fact[1] <= 6 in this config -> no target inversion.

    # Single int8 code slab streamed by the kernel:
    #   0 = ignored voxel or invalid patch, 1 = valid & target 0, 2 = valid & target 1.
    valid_w = (~ignore_masks) & valid_patch[:, None, None, None]
    code = valid_w.astype(jnp.int8) + (valid_w & target_me).astype(jnp.int8)
    code_flat = code.reshape(-1, M_FLAT)

    # Pack PACK=2 patches per 128-lane row (lane-dense slabs).  Only an odd
    # patch count needs one extra (code=0, zero-contribution) row.
    P = emb.shape[0]
    if P % PACK:
        rp = PACK - P % PACK
        emb = jnp.pad(emb, ((0, rp), (0, 0)))
        code_flat = jnp.pad(code_flat, ((0, rp), (0, 0)))
    emb_pk = emb.reshape(-1, PACK * EMB_DIM).astype(jnp.bfloat16)
    code_pk = code_flat.reshape(-1, PACK * M_FLAT)

    # Block-diagonal decoder weights: one MXU matmul decodes both packed patches.
    zw = jnp.zeros_like(dec_w)
    w_blk = jnp.concatenate(
        [jnp.concatenate([dec_w, zw], axis=1),
         jnp.concatenate([zw, dec_w], axis=1)], axis=0).astype(jnp.bfloat16)  # (2C, 2M)
    b_blk = jnp.tile(dec_b, PACK).reshape(1, PACK * M_FLAT).astype(jnp.float32)

    return dice_decoder_loss(emb_pk, w_blk, b_blk, code_pk, **tuning)


def _reference_loss(pred, gt_segm, dec_w, dec_b):
    # Pure-JAX reference of the same math (no Pallas), for validation.  Matmul
    # inputs are bf16-cast to match the kernel's MXU precision.
    real_shape_mask = tuple(pt * fc for pt, fc in zip(MASK_SHAPE, MASK_DWS_FACT))
    ct, cp = get_slicing_crops(pred.shape[2:], gt_segm.shape[-3:],
                               PRED_DWS_FACT, real_shape_mask)
    gt_c, pred_c = gt_segm[ct], pred[cp]
    strides = tuple(s // f for s, f in zip(SAMPLE_STRIDES, PRED_DWS_FACT))
    emb, nb = extract_point_embeddings(pred_c, strides)
    gt_patches = extract_gt_patches(gt_c, real_shape_mask, SAMPLE_STRIDES, nb)[:, 0]
    centers = extract_center_values(gt_c, tuple(int(s / 2) for s in real_shape_mask),
                                    SAMPLE_STRIDES, nb)
    label_c = centers[:, 0]
    ignore = (gt_patches == IGNORE_LABEL).astype(jnp.float32)
    valid = (label_c != IGNORE_LABEL).astype(jnp.float32)[:, None, None, None]
    tgt = (gt_patches != label_c[:, None, None, None]).astype(jnp.float32)
    w = (1.0 - ignore) * valid
    emb_bf = emb.astype(jnp.bfloat16).astype(jnp.float32)
    w_bf = dec_w.astype(jnp.bfloat16).astype(jnp.float32)
    dm = jax.nn.sigmoid(emb_bf @ w_bf + dec_b).reshape(tgt.shape) * w
    tm = tgt * w
    num = jnp.sum(dm * tm)
    den = jnp.sum(dm * dm) + jnp.sum(tm * tm)
    return -2.0 * num / jnp.maximum(den, DICE_EPS)


if __name__ == "__main__":
    key = jax.random.PRNGKey(0)
    k_pred, k_lbl, k_msk, k_w, k_b, k_emb, k_code = jax.random.split(key, 7)

    N, D, H, W = 2, 1, 16, 16
    pred = jax.random.normal(k_pred, (N, EMB_DIM, D, H, W), dtype=jnp.float32)
    labels = jax.random.randint(k_lbl, (N, 1, D, H, W), 0, 6, dtype=jnp.int32)
    extra = jax.random.randint(k_msk, (N, 1, D, H, W), 0, 3, dtype=jnp.int32)
    gt_segm = jnp.concatenate([labels, extra], axis=1)          # (N, 2, D, H, W)

    # Deterministic MaskDecoder params: Linear(EMB_DIM -> prod(MASK_SHAPE)).
    dec_w = (jax.random.normal(k_w, (EMB_DIM, M_FLAT), dtype=jnp.float32)
             / jnp.sqrt(jnp.float32(EMB_DIM)))
    dec_b = 0.01 * jax.random.normal(k_b, (M_FLAT,), dtype=jnp.float32)

    loss = jax.block_until_ready(latent_mask_loss_forward(pred, gt_segm, dec_w, dec_b))
    ref = jax.block_until_ready(_reference_loss(pred, gt_segm, dec_w, dec_b))
    assert np.isfinite(float(loss))
    np.testing.assert_allclose(np.asarray(loss), np.asarray(ref), rtol=1e-4, atol=1e-5)

    # Extra check of the kernel's ragged / multi-step / multi-core path with
    # forced small tiles.  Rows in the final (ragged) tile carry code 0, so the
    # expected value is independent of how the pipeline handles the overhang.
    R, Ce, Me = 130, PACK * EMB_DIM, PACK * M_FLAT
    emb_t = jax.random.normal(k_emb, (R, Ce), dtype=jnp.float32)
    code_t = jax.random.randint(k_code, (R, Me), 0, 3, dtype=jnp.int32)
    code_t = jnp.where(jnp.arange(R)[:, None] < R - 64, code_t, 0).astype(jnp.int8)
    w_t = (jax.random.normal(k_w, (Ce, Me), dtype=jnp.float32)
           / jnp.sqrt(jnp.float32(Ce))).astype(jnp.bfloat16)
    b_t = jnp.zeros((1, Me), jnp.float32)
    out_t = jax.block_until_ready(
        dice_decoder_loss(emb_t.astype(jnp.bfloat16), w_t, b_t, code_t,
                          tile_p_max=64, num_par=2))
    dec_t = jax.nn.sigmoid(emb_t.astype(jnp.bfloat16).astype(jnp.float32)
                           @ w_t.astype(jnp.float32) + b_t)
    wmf = (code_t > 0).astype(jnp.float32)
    mtf = (code_t == 2).astype(jnp.float32)
    ref_t = -2.0 * jnp.sum(dec_t * mtf) / jnp.maximum(
        jnp.sum(dec_t * dec_t * wmf + mtf), DICE_EPS)
    np.testing.assert_allclose(np.asarray(out_t), np.asarray(ref_t),
                               rtol=1e-4, atol=1e-5)

    print("KERNEL_OK")
</pallas_src>

<mosaic_0001>
module attributes {stable_mosaic.version = 11 : i64} {
  func.func @_dice_decode_kernel(%arg0: i32, %arg1: i32, %arg2: memref<4x64xbf16, #tpu.memory_space<vmem>>, %arg3: memref<64x128xbf16, #tpu.memory_space<vmem>>, %arg4: memref<1x128xf32, #tpu.memory_space<vmem>>, %arg5: memref<4x128xi8, #tpu.memory_space<vmem>>, %arg6: memref<1x128xf32, #tpu.memory_space<vmem>>, %arg7: memref<1x128xf32, #tpu.memory_space<vmem>>) attributes {dimension_semantics = [#tpu.dimension_semantics<parallel>, #tpu.dimension_semantics<arbitrary>], iteration_bounds = array<i64: 1, 1>, scalar_prefetch = 0 : i64, scratch_operands = 0 : i64, tpu.core_type = #tpu.core_type<tc>, window_params = [{transform_indices = @transform_0, window_bounds = array<i64: 4, 64>}, {pipeline_mode = #tpu.pipeline_mode<synchronous>, transform_indices = @transform_1, window_bounds = array<i64: 64, 128>}, {pipeline_mode = #tpu.pipeline_mode<synchronous>, transform_indices = @transform_2, window_bounds = array<i64: 1, 128>}, {transform_indices = @transform_3, window_bounds = array<i64: 4, 128>}, {transform_indices = @transform_4, window_bounds = array<i64: 1, 128>}, {transform_indices = @transform_5, window_bounds = array<i64: 1, 128>}]} {
    %c0_i32 = arith.constant 0 : i32
    %0 = arith.cmpi eq, %arg1, %c0_i32 : i32
    %1 = arith.extui %0 : i1 to i32
    %c0_i32_0 = arith.constant 0 : i32
    %2 = arith.cmpi ne, %1, %c0_i32_0 : i32
    scf.if %2 {
      %cst_20 = arith.constant 0.000000e+00 : f32
      %38 = vector.broadcast %cst_20 : f32 to vector<1x128xf32>
      %c0_21 = arith.constant 0 : index
      %c0_22 = arith.constant 0 : index
      %39 = vector.load %arg6[%c0_21, %c0_22] : memref<1x128xf32, #tpu.memory_space<vmem>>, vector<1x128xf32>
      tpu.vector_store %arg6[%c0_21, %c0_22], %38 {strides = array<i32>} : memref<1x128xf32, #tpu.memory_space<vmem>>, vector<1x128xf32>,
      %cst_23 = arith.constant 0.000000e+00 : f32
      %40 = vector.broadcast %cst_23 : f32 to vector<1x128xf32>
      %c0_24 = arith.constant 0 : index
      %c0_25 = arith.constant 0 : index
      %41 = vector.load %arg7[%c0_24, %c0_25] : memref<1x128xf32, #tpu.memory_space<vmem>>, vector<1x128xf32>
      tpu.vector_store %arg7[%c0_24, %c0_25], %40 {strides = array<i32>} : memref<1x128xf32, #tpu.memory_space<vmem>>, vector<1x128xf32>,
    } else {
    }
    %c0 = arith.constant 0 : index
    %c0_1 = arith.constant 0 : index
    %3 = vector.load %arg2[%c0, %c0_1] : memref<4x64xbf16, #tpu.memory_space<vmem>>, vector<4x64xbf16>
    %c0_2 = arith.constant 0 : index
    %c0_3 = arith.constant 0 : index
    %4 = vector.load %arg3[%c0_2, %c0_3] : memref<64x128xbf16, #tpu.memory_space<vmem>>, vector<64x128xbf16>
    %cst = arith.constant dense<0.000000e+00> : vector<4x128xf32>
    %5 = tpu.matmul %3, %4, %cst {dimension_numbers = #tpu.dot_dimension_numbers<[1], [0], [0], [1], [0, 0, 1, 1], [], []>} : vector<4x64xbf16>, vector<64x128xbf16>, vector<4x128xf32> -> vector<4x128xf32>
    %c0_4 = arith.constant 0 : index
    %c0_5 = arith.constant 0 : index
    %6 = vector.load %arg4[%c0_4, %c0_5] : memref<1x128xf32, #tpu.memory_space<vmem>>, vector<1x128xf32>
    %7 = vector.broadcast %6 : vector<1x128xf32> to vector<4x128xf32>
    %8 = arith.addf %5, %7 : vector<4x128xf32>
    %9 = arith.negf %8 : vector<4x128xf32>
    %10 = math.exp %9 : vector<4x128xf32>
    %cst_6 = arith.constant 1.000000e+00 : f32
    %11 = vector.broadcast %cst_6 : f32 to vector<4x128xf32>
    %12 = arith.addf %11, %10 : vector<4x128xf32>
    %13 = arith.divf %11, %12 : vector<4x128xf32>
    %c0_7 = arith.constant 0 : index
    %c0_8 = arith.constant 0 : index
    %14 = vector.load %arg5[%c0_7, %c0_8] : memref<4x128xi8, #tpu.memory_space<vmem>>, vector<4x128xi8>
    %15 = arith.extsi %14 : vector<4x128xi8> to vector<4x128xi32>
    %c0_i32_9 = arith.constant 0 : i32
    %16 = vector.broadcast %c0_i32_9 : i32 to vector<4x128xi32>
    %17 = arith.cmpi sgt, %15, %16 : vector<4x128xi32>
    %18 = arith.extui %17 : vector<4x128xi1> to vector<4x128xi32>
    %19 = arith.sitofp %18 : vector<4x128xi32> to vector<4x128xf32>
    %c2_i32 = arith.constant 2 : i32
    %20 = vector.broadcast %c2_i32 : i32 to vector<4x128xi32>
    %21 = arith.cmpi eq, %15, %20 : vector<4x128xi32>
    %22 = arith.extui %21 : vector<4x128xi1> to vector<4x128xi32>
    %23 = arith.sitofp %22 : vector<4x128xi32> to vector<4x128xf32>
    %c0_10 = arith.constant 0 : index
    %c0_11 = arith.constant 0 : index
    %24 = vector.load %arg6[%c0_10, %c0_11] : memref<1x128xf32, #tpu.memory_space<vmem>>, vector<1x128xf32>
    %25 = arith.mulf %13, %23 : vector<4x128xf32>
    %cst_12 = arith.constant dense<0.000000e+00> : vector<128xf32>
    %26 = vector.multi_reduction <add>, %25, %cst_12 [0] : vector<4x128xf32> to vector<128xf32>
    %27 = vector.shape_cast %26 : vector<128xf32> to vector<1x128xf32>
    %28 = arith.addf %24, %27 : vector<1x128xf32>
    %c0_13 = arith.constant 0 : index
    %c0_14 = arith.constant 0 : index
    %29 = vector.load %arg6[%c0_13, %c0_14] : memref<1x128xf32, #tpu.memory_space<vmem>>, vector<1x128xf32>
    tpu.vector_store %arg6[%c0_13, %c0_14], %28 {strides = array<i32>} : memref<1x128xf32, #tpu.memory_space<vmem>>, vector<1x128xf32>,
    %c0_15 = arith.constant 0 : index
    %c0_16 = arith.constant 0 : index
    %30 = vector.load %arg7[%c0_15, %c0_16] : memref<1x128xf32, #tpu.memory_space<vmem>>, vector<1x128xf32>
    %31 = arith.mulf %13, %13 : vector<4x128xf32>
    %32 = arith.mulf %31, %19 : vector<4x128xf32>
    %33 = arith.addf %32, %23 : vector<4x128xf32>
    %cst_17 = arith.constant dense<0.000000e+00> : vector<128xf32>
    %34 = vector.multi_reduction <add>, %33, %cst_17 [0] : vector<4x128xf32> to vector<128xf32>
    %35 = vector.shape_cast %34 : vector<128xf32> to vector<1x128xf32>
    %36 = arith.addf %30, %35 : vector<1x128xf32>
    %c0_18 = arith.constant 0 : index
    %c0_19 = arith.constant 0 : index
    %37 = vector.load %arg7[%c0_18, %c0_19] : memref<1x128xf32, #tpu.memory_space<vmem>>, vector<1x128xf32>
    tpu.vector_store %arg7[%c0_18, %c0_19], %36 {strides = array<i32>} : memref<1x128xf32, #tpu.memory_space<vmem>>, vector<1x128xf32>,
    return
  }
  func.func @transform_0(%arg0: i32, %arg1: i32) -> (i32, i32) {
    %c1_i32 = arith.constant 1 : i32
    %0 = arith.muli %arg0, %c1_i32 : i32
    %1 = arith.addi %0, %arg1 : i32
    %c0_i32 = arith.constant 0 : i32
    %c0_i32_0 = arith.constant 0 : i32
    return %1, %c0_i32 : i32, i32
  }
  func.func @transform_1(%arg0: i32, %arg1: i32) -> (i32, i32) {
    %c0_i32 = arith.constant 0 : i32
    %c0_i32_0 = arith.constant 0 : i32
    %c0_i32_1 = arith.constant 0 : i32
    return %c0_i32, %c0_i32_0 : i32, i32
  }
  func.func @transform_2(%arg0: i32, %arg1: i32) -> (i32, i32) {
    %c0_i32 = arith.constant 0 : i32
    %c0_i32_0 = arith.constant 0 : i32
    %c0_i32_1 = arith.constant 0 : i32
    return %c0_i32, %c0_i32_0 : i32, i32
  }
  func.func @transform_3(%arg0: i32, %arg1: i32) -> (i32, i32) {
    %c1_i32 = arith.constant 1 : i32
    %0 = arith.muli %arg0, %c1_i32 : i32
    %1 = arith.addi %0, %arg1 : i32
    %c0_i32 = arith.constant 0 : i32
    %c0_i32_0 = arith.constant 0 : i32
    return %1, %c0_i32 : i32, i32
  }
  func.func @transform_4(%arg0: i32, %arg1: i32) -> (i32, i32) {
    %c0_i32 = arith.constant 0 : i32
    %c0_i32_0 = arith.constant 0 : i32
    return %arg0, %c0_i32 : i32, i32
  }
  func.func @transform_5(%arg0: i32, %arg1: i32) -> (i32, i32) {
    %c0_i32 = arith.constant 0 : i32
    %c0_i32_0 = arith.constant 0 : i32
    return %arg0, %c0_i32 : i32, i32
  }
}

</mosaic_0001>

<bundles_post_ra>
// kernel: tpu_custom_call.1
= control target key start
LH: loop header
LB: loop body
LE: loop exit
PB: predicated region body
PF: predicated region fallthrough
CT: control target
= control target key end

     0   :  { %11 = vsyncpa [#allocation3], 0  ;;  %s537_s0 = inlined_call_operand.hbm [shape: bf16[4,64], index: 0, kind: input, shape index: {}]   ;;  %s538_s1 = inlined_call_operand.hbm [shape: bf16[64,128], index: 1, kind: input, shape index: {}]   ;;  %s539_s2 = inlined_call_operand.hbm [shape: f32[1,128], index: 2, kind: input, shape index: {}]   ;;  %s540_s3 = inlined_call_operand.hbm [shape: s8[4,128], index: 3, kind: input, shape index: {}]   ;;  %s541_s4 = inlined_call_operand.hbm [shape: f32[1,128], index: 4, kind: output, shape index: {0}]   ;;  %s542_s5 = inlined_call_operand.hbm [shape: f32[1,128], index: 5, kind: output, shape index: {1}]  }
   0x1   :  { %12 = vsyncpa [#allocation6], 0 }
   0x2   :  { %13 = vsyncpa [#allocation9], 0 }
   0x3   :  { %14 = vsyncpa [#allocation4], 0 }
   0x4   :  { %15 = vsyncpa [#allocation12], 0  ;;  %s425_s18 = smov [#allocation5]   ;;  %s283_s22 = scalar_lea.hbm %s538_s1, 512 }
   0x5   :  { %s34_s19 = sshll.u32 %s425_s18, 4  ;;  %p284_p0 = scmp.ne.s32.totalorder %s538_s1, %s283_s22  ;;  %s35_s19 = int_to_ptr.vmem [resolvable:$true] %s34_s19 }
   0x6   :  { %p287_p1 = scmp.lt.u32.totalorder %s283_s22, %s538_s1 }
   0x8   :  { %p289_p2 = pnand %p287_p1, %p284_p0 }
   0xa   :  { %292 = shalt.err (!%p289_p2)
}
   0xb   :  { %s293_s27 = scalar_lea.vmem %s35_s19, 512  ;;  %p298_p4 = scmp.lt.s32.totalorder %s35_s19, %s35_s19 }
   0xc   :  { %p294_p3 = scmp.ne.s32.totalorder %s35_s19, %s293_s27  ;;  %p299_p5 = scmp.lt.s32.totalorder %s293_s27, %s293_s27 }
   0xe   :  { %p300_p6 = por %p299_p5, %p298_p4 }
  0x10   :  { %p301_p7 = pnand %p300_p6, %p294_p3 }
  0x12   :  { %304 = shalt.err (!%p301_p7)
}
  0x13   :  { %s426_s28 = smov 64   ;;  %s427_s29 = smov 4  }
  0x14   :  { %40 = dma.hbm_to_vmem [thread:$0]  %s538_s1, 512, %s35_s19, [#allocation6], %s426_s28, %s426_s28, %s427_s29  }
  0x15   :  { %s428_s7 = smov [#allocation2]   ;;  %s429_s9 = smov [#allocation7]  }
  0x16   :  { %s25_s8 = sshll.u32 %s428_s7, 4  ;;  %s47_s10 = sshll.u32 %s429_s9, 4  ;;  %s26_s8 = int_to_ptr.vmem [resolvable:$true] %s25_s8  ;;  %s48_s10 = int_to_ptr.vmem [resolvable:$true] %s47_s10 }
  0x17   :  { %s305_s13 = scalar_lea.hbm %s537_s0, 32 }
  0x18   :  { %p306_p8 = scmp.ne.s32.totalorder %s537_s0, %s305_s13  ;;  %p309_p9 = scmp.lt.u32.totalorder %s305_s13, %s537_s0 }
  0x1a   :  { %p311_p10 = pnand %p309_p9, %p306_p8 }
  0x1c   :  { %314 = shalt.err (!%p311_p10)
}
  0x1d   :  { %s315_s1 = scalar_lea.vmem %s26_s8, 32  ;;  %p320_p12 = scmp.lt.s32.totalorder %s26_s8, %s26_s8 }
  0x1e   :  { %p316_p11 = scmp.ne.s32.totalorder %s26_s8, %s315_s1  ;;  %p321_p13 = scmp.lt.s32.totalorder %s315_s1, %s315_s1 }
  0x20   :  { %p322_p0 = por %p321_p13, %p320_p12 }
  0x22   :  { %p323_p1 = pnand %p322_p0, %p316_p11 }
  0x24   :  { %326 = shalt.err (!%p323_p1)
}
  0x25   :  { %28 = dma.hbm_to_vmem [thread:$0]  %s537_s0, 32, %s26_s8, [#allocation3]  }
  0x26   :  { %s327_s22 = scalar_lea.hbm %s539_s2, 16 }
  0x27   :  { %p328_p2 = scmp.ne.s32.totalorder %s539_s2, %s327_s22  ;;  %p331_p3 = scmp.lt.u32.totalorder %s327_s22, %s539_s2 }
  0x29   :  { %p333_p4 = pnand %p331_p3, %p328_p2 }
  0x2b   :  { %336 = shalt.err (!%p333_p4)
}
  0x2c   :  { %s337_s27 = scalar_lea.vmem %s48_s10, 16  ;;  %s341_s28 = scalar_lea.vmem %s48_s10, 32 }
  0x2d   :  { %p338_p5 = scmp.ne.s32.totalorder %s48_s10, %s337_s27  ;;  %p342_p6 = scmp.lt.s32.totalorder %s48_s10, %s48_s10 }
  0x2e   :  { %p343_p7 = scmp.lt.s32.totalorder %s341_s28, %s337_s27 }
  0x30   :  { %p344_p8 = por %p343_p7, %p342_p6 }
  0x32   :  { %p345_p9 = pnand %p344_p8, %p338_p5 }
  0x34   :  { %348 = shalt.err (!%p345_p9)
}
  0x35   :  { %50 = dma.hbm_to_vmem [thread:$0]  %s539_s2, 16, %s48_s10, [#allocation6]  }
  0x36   :  { %s430_s30 = smov [#allocation8]   ;;  %s349_s9 = scalar_lea.hbm %s540_s3, 16 }
  0x37   :  { %s60_s6 = sshll.u32 %s430_s30, 4  ;;  %p350_p10 = scmp.ne.s32.totalorder %s540_s3, %s349_s9  ;;  %s61_s6 = int_to_ptr.vmem [resolvable:$true] %s60_s6 }
  0x38   :  { %p353_p11 = scmp.lt.u32.totalorder %s349_s9, %s540_s3 }
  0x3a   :  { %p355_p12 = pnand %p353_p11, %p350_p10 }
  0x3c   :  { %358 = shalt.err (!%p355_p12)
}
  0x3d   :  { %s359_s15 = scalar_lea.vmem %s61_s6, 16  ;;  %s363_s2 = scalar_lea.vmem %s61_s6, 32 }
  0x3e   :  { %p360_p13 = scmp.ne.s32.totalorder %s61_s6, %s359_s15  ;;  %p364_p0 = scmp.lt.s32.totalorder %s61_s6, %s61_s6 }
  0x3f   :  { %p365_p1 = scmp.lt.s32.totalorder %s363_s2, %s359_s15 }
  0x41   :  { %p366_p2 = por %p365_p1, %p364_p0 }
  0x43   :  { %p367_p3 = pnand %p366_p2, %p360_p13 }
  0x45   :  { %370 = shalt.err (!%p367_p3)
}
  0x46   :  { %63 = dma.hbm_to_vmem [thread:$0]  %s540_s3, 16, %s61_s6, [#allocation9]  }
  0x47   :  { %415 = dma.done.wait [#allocation3], 32  }
  0x48   :  { %416 = vsyncadd [#allocation3], 4294967264 }
  0x49   :  { %417 = dma.done.wait [#allocation6], 528  }
  0x4a   :  { %418 = vsyncadd [#allocation6], 4294966768 }
  0x4b   :  { %419 = dma.done.wait [#allocation9], 16  }
  0x4c   :  { %420 = vsyncadd [#allocation9], 4294967280  ;;  %v431_v0 = vmov 0.0   ;;  %vm432_vm0 = vmmov 0   ;;  %v275_v1 = vld [vmem:[#allocation5] sm:$0xff]   ;;  %v276_v2 = vld [vmem:[#allocation5 + $0x8] sm:$0xff]  }
  0x4d   :  { %253 = vmatprep.subr.bf16.mxu0 %v431_v0  ;;  %83 = vst [vmem:[#allocation10] sm:$0x1] %v431_v0  ;;  %84 = vst [vmem:[#allocation11] sm:$0x1] %v431_v0  ;;  %261 = vmatprep.mubr.msk.bf16.mxu0 %vm432_vm0, %v431_v0  ;;  %v277_v3 = vld [vmem:[#allocation5 + $0x10] sm:$0xff]   ;;  %v278_v4 = vld [vmem:[#allocation5 + $0x18] sm:$0xff]  }
  0x4e   :  { %254 = vmatpush3.bf16.msra.mxu0 %v275_v1  ;;  %v85_v5 = vld [vmem:[#allocation2] sm:$0x3]  ;;  %vm125_vm1 = vcmask 523264   ;;  %v239_v6 = vld [vmem:[#allocation7] ss:$0 sm:$0xff]  ;;  %vm185_vm4 = vcmask 1043456  }
  0x4f   :  { %255 = vmatprep.subr.bf16.mxu0 %v431_v0  ;;  %v175_v15 = vld [vmem:[#allocation8] sm:$0x1]  ;;  %s433_s3 = smov [#allocation10]   ;;  %s434_s1 = smov [#allocation11]  }
  0x50   :  { %v176_v16 = vunpack.c.0.s8 %v175_v15  ;;  %s214_s17 = sshll.u32 %s433_s3, 4  ;;  %s224_s18 = sshll.u32 %s434_s1, 4  ;;  %s215_s17 = int_to_ptr.vmem [resolvable:$true] %s214_s17  ;;  %s225_s18 = int_to_ptr.vmem [resolvable:$true] %s224_s18 }
  0x51   :  { %s371_s19 = scalar_lea.vmem %s215_s17, 16  ;;  %s375_s20 = scalar_lea.vmem %s215_s17, 32 }
  0x52   :  { %256 = vmatpush3.bf16.msra.mxu0 %v276_v2  ;;  %vm180_vm2 = vcmp.eq.s32.totalorder %v176_v16, 2  ;;  %vm177_vm3 = vcmp.gt.s32.totalorder %v176_v16, 0  ;;  %p372_p4 = scmp.ne.s32.totalorder %s215_s17, %s371_s19  ;;  %p376_p5 = scmp.lt.s32.totalorder %s215_s17, %s215_s17 }
  0x53   :  { %257 = vmatprep.subr.bf16.mxu0 %v431_v0  ;;  %v247_v17 = vsel %vm180_vm2, 1.0, %v431_v0  ;;  %v246_v19 = vsel %vm177_vm3, 1.0, %v431_v0  ;;  %p377_p6 = scmp.lt.s32.totalorder %s375_s20, %s371_s19 }
  0x54   :  { %v183_v34 = vld [vmem:[#allocation10] sm:$0x1]  ;;  %v195_v39 = vld [vmem:[#allocation11] sm:$0x1] }
  0x55   :  { %p378_p7 = por %p377_p6, %p376_p5 }
  0x56   :  { %258 = vmatpush3.bf16.msra.mxu0 %v277_v3 }
  0x57   :  { %259 = vmatprep.subr.bf16.mxu0 %v431_v0  ;;  %p379_p8 = pnand %p378_p7, %p372_p4 }
  0x5a   :  { %260 = vmatpush3.bf16.msra.mxu0 %v278_v4 }
  0x5d   :  { %262 = vmatmul.mubr.msk.bf16.vlgmr.msra.gmra.mrb[0].mxu0 %vm125_vm1, %v85_v5 }
 0x130   :  { %v163_v7 = vpop.f32.mrb[0].mxu0 }
 0x131   :  { %v164_v8 = vadd.f32 %v239_v6, %v163_v7  ;;  %v263_v9 = vpop.f32.mrb[1].mxu0 }
 0x132   :  { %v166_v10 = vpop.f32.mrb[2].mxu0 }
 0x133   :  { %v245_v11 = vmul.f32 -1.442695, %v164_v8  ;;  %v264_v12 = vpop.f32.mrb[3].mxu0 }
 0x135   :  { %279 = vpow2.f32 %v245_v11 }
 0x13f   :  { %v280_v13 = vpop.eup %279 }
 0x140   :  { %v172_v14 = vadd.f32 1.0, %v280_v13 }
 0x142   :  { %281 = vrcp.f32 %v172_v14 }
 0x14c   :  { %v282_v18 = vpop.eup %281 }
 0x14d   :  { %v196_v20 = vmul.f32 %v282_v18, %v282_v18  ;;  %v184_v21 = vmul.f32 %v282_v18, %v247_v17 }
 0x14f   :  { %v186_v22 = vsel %vm185_vm4, %v184_v21, 0.0  ;;  %v197_v23 = vmul.f32 %v246_v19, %v196_v20 }
 0x150   :  { %v187_v24 = vrot.slane %v186_v22, 4 }
 0x151   :  { %v198_v25 = vadd.f32 %v247_v17, %v197_v23 }
 0x152   :  { %v188_v26 = vadd.f32 %v187_v24, %v186_v22 }
 0x153   :  { %v199_v27 = vsel %vm185_vm4, %v198_v25, 0.0 }
 0x154   :  { %v189_v28 = vrot.slane %v188_v26, 2  ;;  %v200_v29 = vrot.slane %v199_v27, 4 }
 0x156   :  { %v190_v30 = vadd.f32 %v189_v28, %v188_v26  ;;  %v201_v31 = vadd.f32 %v200_v29, %v199_v27 }
 0x158   :  { %v191_v32 = vrot.slane %v190_v30, 1  ;;  %v202_v33 = vrot.slane %v201_v31, 2 }
 0x15a   :  { %v192_v35 = vadd.f32 %v191_v32, %v190_v30  ;;  %v203_v36 = vadd.f32 %v202_v33, %v201_v31 }
 0x15c   :  { %v193_v37 = vadd.f32 %v192_v35, %v183_v34  ;;  %v204_v38 = vrot.slane %v203_v36, 1 }
 0x15e   :  { %194 = vst [vmem:[#allocation10] sm:$0x1] %v193_v37  ;;  %v205_v40 = vadd.f32 %v204_v38, %v203_v36 }
 0x15f   :  { %382 = shalt.err (!%p379_p8)
}
 0x160   :  { %s383_s23 = scalar_lea.hbm %s541_s4, 16 }
 0x161   :  { %p384_p9 = scmp.ne.s32.totalorder %s541_s4, %s383_s23  ;;  %p387_p10 = scmp.lt.u32.totalorder %s383_s23, %s541_s4 }
 0x163   :  { %p389_p11 = pnand %p387_p10, %p384_p9 }
 0x165   :  { %392 = shalt.err (!%p389_p11)
}
 0x166   :  { %217 = dma.vmem_to_hbm [thread:$0]  %s215_s17, 16, %s541_s4, [#allocation4]   ;;  %v206_v41 = vadd.f32 %v205_v40, %v195_v39 }
 0x167   :  { %s393_s29 = scalar_lea.vmem %s225_s18, 16  ;;  %s397_s30 = scalar_lea.vmem %s225_s18, 32 }
 0x168   :  { %207 = vst [vmem:[#allocation11] sm:$0x1] %v206_v41  ;;  %p394_p12 = scmp.ne.s32.totalorder %s225_s18, %s393_s29  ;;  %p398_p13 = scmp.lt.s32.totalorder %s225_s18, %s225_s18 }
 0x169   :  { %p399_p0 = scmp.lt.s32.totalorder %s397_s30, %s393_s29 }
 0x16b   :  { %p400_p1 = por %p399_p0, %p398_p13 }
 0x16d   :  { %p401_p2 = pnand %p400_p1, %p394_p12 }
 0x16f   :  { %404 = shalt.err (!%p401_p2)
}
 0x170   :  { %s405_s8 = scalar_lea.hbm %s542_s5, 16 }
 0x171   :  { %p406_p3 = scmp.ne.s32.totalorder %s542_s5, %s405_s8  ;;  %p409_p4 = scmp.lt.u32.totalorder %s405_s8, %s542_s5 }
 0x173   :  { %p411_p5 = pnand %p409_p4, %p406_p3 }
 0x175   :  { %414 = shalt.err (!%p411_p5)
}
 0x176   :  { %227 = dma.vmem_to_hbm [thread:$0]  %s225_s18, 16, %s542_s5, [#allocation12]  }
 0x177   :  { %421 = dma.done.wait [#allocation4], 16  }
 0x178   :  { %422 = vsyncadd [#allocation4], 4294967280 }
 0x179   :  { %423 = dma.done.wait [#allocation12], 16  }
 0x17a   :  { %424 = vsyncadd [#allocation12], 4294967280 }
 0x17b   :  { %234 = vsyncpa [#allocation3], 1 }
 0x17c   :  { %235 = vsyncpa [#allocation6], 1 }
 0x17d   :  { %236 = vsyncpa [#allocation9], 1 }
 0x17e   :  { %237 = vsyncpa [#allocation4], 1 }
 0x17f   :  { %238 = vsyncpa [#allocation12], 1 }

</bundles_post_ra>
